<compile_context>
chip_gen: v7x
topology: tpu7x:2x2x1
jax: 0.10.0
libtpu: 0.0.40
codegen_flags: <defaults>
</compile_context>

<pallas_src>
import functools

import jax
import jax.numpy as jnp
from jax.experimental import pallas as pl
from jax.experimental.pallas import tpu as pltpu

_QMAX = 127.0            # symmetric int8 range [-127, 127]
_LANES = 128
_MIB = 1024 * 1024


def _sublanes_for(dtype) -> int:
    # Native packed tile heights: f32 -> 8, bf16 -> 16, int8/fp8 -> 32.
    return {4: 8, 2: 16, 1: 32}.get(jnp.dtype(dtype).itemsize, 8)


def _round_up(x: int, m: int) -> int:
    return ((x + m - 1) // m) * m


@functools.lru_cache(maxsize=1)
def _tpu_tuning():
    """Generation-aware VMEM limit / fused threshold / streaming block size."""
    kind = ""
    try:
        kind = (getattr(jax.devices()[0], "device_kind", "") or "").lower()
    except Exception:
        pass
    if "v5" in kind or "v6" in kind:
        # 128 MiB physical VMEM: larger scoped limit, larger fused band/blocks.
        return {"vmem_limit": 64 * _MIB, "fused_bytes": 12 * _MIB,
                "target_bytes": 6 * _MIB}
    # v7x (64 MiB physical VMEM) or unknown generation: conservative config.
    return {"vmem_limit": 48 * _MIB, "fused_bytes": 8 * _MIB,
            "target_bytes": 4 * _MIB}


def _natural_2d_layout(shape):
    """(rows, width) with width = product of trailing dims that is a multiple
    of 128 (lane-dense, no padding needed).  None if no such split exists."""
    if not shape:
        return None
    w = 1
    for k in range(len(shape) - 1, 0, -1):
        w *= shape[k]
        if w % _LANES == 0:
            r = 1
            for d in shape[:k]:
                r *= d
            return r, w
    return None


# ---------------------------------------------------------------------------
# Fused path: whole slab resident in VMEM, amax + quantize in one kernel
# (2N HBM traffic, single launch).
# ---------------------------------------------------------------------------
def _fused_quant_kernel(x_ref, o_ref):
    x = x_ref[...].astype(jnp.float32)
    amax = jnp.max(jnp.abs(x))
    has_signal = amax > 0.0
    scale = jnp.where(has_signal, amax / _QMAX, 1.0)
    inv_scale = jnp.where(has_signal, _QMAX / amax, 0.0)
    q = jnp.clip(jnp.round(x * inv_scale), -_QMAX, _QMAX)
    o_ref[...] = (q * scale).astype(o_ref.dtype)


def _run_fused(x2d, orig_dtype, vmem_limit):
    return pl.pallas_call(
        _fused_quant_kernel,
        out_shape=jax.ShapeDtypeStruct(x2d.shape, orig_dtype),
        compiler_params=pltpu.CompilerParams(vmem_limit_bytes=vmem_limit),
    )(x2d)


# ---------------------------------------------------------------------------
# Streaming path, pass 1: per-block partial max|x| (fully parallel grid).
# |x| / max computed in the input dtype (bf16 max is exact); only the scalar
# result is cast to f32.  The ragged tail block (rows beyond `valid_rows`)
# contains unspecified data and is masked out.
# ---------------------------------------------------------------------------
def _make_partial_amax_kernel(valid_rows, block_rows, block_width, needs_mask):
    def kernel(x_ref, pmax_ref):
        ax = jnp.abs(x_ref[...])
        if needs_mask:
            base = pl.program_id(0) * block_rows
            ridx = jax.lax.broadcasted_iota(jnp.int32,
                                            (block_rows, block_width), 0)
            ax = jnp.where(base + ridx < valid_rows, ax, jnp.zeros_like(ax))
        tile_max = jnp.max(ax).astype(jnp.float32)
        pmax_ref[...] = jnp.full(pmax_ref.shape, tile_max, jnp.float32)
    return kernel


# ---------------------------------------------------------------------------
# Streaming path, pass 2: elementwise fake-quantization with the global scale.
# amax comes in as a (1, 1) SMEM scalar.  Out-of-range writes of the ragged
# tail block are dropped by Pallas, so no masking is needed here.
# ---------------------------------------------------------------------------
def _quant_kernel(amax_ref, x_ref, o_ref):
    amax = amax_ref[0, 0]
    has_signal = amax > 0.0
    scale = jnp.where(has_signal, amax / _QMAX, 1.0)
    inv_scale = jnp.where(has_signal, _QMAX / amax, 0.0)
    x = x_ref[...].astype(jnp.float32)
    q = jnp.clip(jnp.round(x * inv_scale), -_QMAX, _QMAX)
    o_ref[...] = (q * scale).astype(o_ref.dtype)


def _stream_quantize_2d(x2d, rows, width, orig_dtype, cfg):
    """Two-pass streaming fake-quantization over an (rows, width) slab.

    width must be a multiple of 128 and rows >= sublanes; the row grid may be
    ragged (handled by in-kernel masking / dropped writes)."""
    itemsize = jnp.dtype(orig_dtype).itemsize
    sublanes = _sublanes_for(orig_dtype)

    desired = max(sublanes,
                  (cfg["target_bytes"] // (width * itemsize)) // sublanes * sublanes)
    block_rows = min(desired, (rows // sublanes) * sublanes)
    n_blocks = pl.cdiv(rows, block_rows)
    needs_mask = (rows % block_rows) != 0

    # Pass 1: per-block partial maxes (parallel -> both TCs on v7x).
    partials = pl.pallas_call(
        _make_partial_amax_kernel(rows, block_rows, width, needs_mask),
        out_shape=jax.ShapeDtypeStruct((n_blocks, 8, _LANES), jnp.float32),
        grid_spec=pltpu.PrefetchScalarGridSpec(
            num_scalar_prefetch=0,
            grid=(n_blocks,),
            in_specs=[pl.BlockSpec((block_rows, width), lambda i: (i, 0))],
            out_specs=pl.BlockSpec((1, 8, _LANES), lambda i: (i, 0, 0)),
        ),
        compiler_params=pltpu.CompilerParams(
            dimension_semantics=("parallel",),
            vmem_limit_bytes=cfg["vmem_limit"],
        ),
    )(x2d)
    amax = jnp.max(partials).reshape(1, 1)   # tiny XLA reduce over n_blocks*1024

    # Pass 2: elementwise fake-quantize with the global scale.
    y2d = pl.pallas_call(
        _quant_kernel,
        out_shape=jax.ShapeDtypeStruct((rows, width), orig_dtype),
        grid_spec=pltpu.PrefetchScalarGridSpec(
            num_scalar_prefetch=0,
            grid=(n_blocks,),
            in_specs=[
                pl.BlockSpec(memory_space=pltpu.MemorySpace.SMEM),
                pl.BlockSpec((block_rows, width), lambda i: (i, 0)),
            ],
            out_specs=pl.BlockSpec((block_rows, width), lambda i: (i, 0)),
        ),
        compiler_params=pltpu.CompilerParams(
            dimension_semantics=("parallel",),
            vmem_limit_bytes=cfg["vmem_limit"],
        ),
    )(amax, x2d)
    return y2d


def quantized_activation(nx: jax.Array, *,
                         fused_bytes_limit: int | None = None,
                         target_block_bytes: int | None = None) -> jax.Array:
    """Symmetric per-tensor 8-bit fake quantization of activation `nx`.

    Accepts any shape (e.g. NCHW); returns same shape & dtype.
    """
    orig_shape = nx.shape
    orig_dtype = nx.dtype
    total = nx.size
    if total == 0:
        return nx

    cfg = dict(_tpu_tuning())
    if fused_bytes_limit is not None:
        cfg["fused_bytes"] = fused_bytes_limit
    if target_block_bytes is not None:
        cfg["target_bytes"] = target_block_bytes

    itemsize = jnp.dtype(orig_dtype).itemsize
    sublanes = _sublanes_for(orig_dtype)
    layout = _natural_2d_layout(orig_shape)

    # ---------------- fused single-block path (2N HBM traffic) --------------
    if total * itemsize <= cfg["fused_bytes"]:
        if layout is not None and layout[0] >= sublanes:
            rows, w = layout
            y2d = _run_fused(nx.reshape(rows, w), orig_dtype, cfg["vmem_limit"])
            return y2d.reshape(orig_shape)
        # Small, oddly-shaped slab: cheap zero-pad to a lane-dense tile.
        flat = jnp.ravel(nx)
        padded = _round_up(total, sublanes * _LANES)
        if padded != total:
            flat = jnp.pad(flat, (0, padded - total))  # zeros never raise max|x|
        w = _LANES
        for cand in (4096, 2048, 1024, 512, 256, 128):
            if padded % (cand * sublanes) == 0:
                w = cand
                break
        y2d = _run_fused(flat.reshape(padded // w, w), orig_dtype,
                         cfg["vmem_limit"])
        y_flat = jnp.ravel(y2d)
        if padded != total:
            y_flat = y_flat[:total]
        return y_flat.reshape(orig_shape)

    # ---------------- streaming two-pass path (large activations) -----------
    if (layout is not None
            and layout[0] >= sublanes
            and layout[1] * sublanes * itemsize <= cfg["target_bytes"]):
        # Common NN case: lane axis is a multiple of 128 -> no pad, no slice;
        # the ragged row tail is masked in pass 1, dropped in pass 2.
        rows, w = layout
        y2d = _stream_quantize_2d(nx.reshape(rows, w), rows, w,
                                  orig_dtype, cfg)
        return y2d.reshape(orig_shape)

    # TODO(synk): exotic shapes (no trailing-dim product divisible by 128, or a
    # single row too wide for one block) still pay one pad + one slice pass.
    flat = jnp.ravel(nx)
    w = 512
    padded = _round_up(total, sublanes * w)
    if padded != total:
        flat = jnp.pad(flat, (0, padded - total))      # zeros never raise max|x|
    rows = padded // w
    y2d = _stream_quantize_2d(flat.reshape(rows, w), rows, w, orig_dtype, cfg)
    y_flat = jnp.ravel(y2d)
    if padded != total:
        y_flat = y_flat[:total]
    return y_flat.reshape(orig_shape)


def _reference(nx):
    """Pure-JAX reference for correctness checking."""
    xf = nx.astype(jnp.float32)
    amax = jnp.max(jnp.abs(xf))
    scale = jnp.where(amax > 0, amax / _QMAX, 1.0)
    inv = jnp.where(amax > 0, _QMAX / amax, 0.0)
    q = jnp.clip(jnp.round(xf * inv), -_QMAX, _QMAX)
    return (q * scale).astype(nx.dtype)


if __name__ == "__main__":
    key = jax.random.PRNGKey(0)

    # 1) NCHW activation -> fused (VMEM-resident) path, no padding.
    x = jax.random.normal(key, (2, 4, 16, 16), dtype=jnp.float32)
    y_ref = _reference(x)
    y = jax.block_until_ready(quantized_activation(x))
    assert y.shape == x.shape and y.dtype == x.dtype
    assert jnp.allclose(y, y_ref, atol=1e-5, rtol=1e-5), "fused path mismatch"

    # 2) Streaming two-pass path (force by setting the fused threshold to 0).
    y_t = jax.block_until_ready(quantized_activation(x, fused_bytes_limit=0))
    assert y_t.shape == x.shape and y_t.dtype == x.dtype
    assert jnp.allclose(y_t, y_ref, atol=1e-5, rtol=1e-5), "tiled path mismatch"

    # 3) Streaming path with a ragged row tail (exercises in-kernel masking).
    xr = jax.random.normal(jax.random.PRNGKey(1), (2, 3, 5, 128),
                           dtype=jnp.float32)
    yr_ref = _reference(xr)
    yr = jax.block_until_ready(quantized_activation(xr, fused_bytes_limit=0))
    assert yr.shape == xr.shape and yr.dtype == xr.dtype
    assert jnp.allclose(yr, yr_ref, atol=1e-5, rtol=1e-5), "masked tail mismatch"

    # 4) Shape with no 128-multiple trailing split -> padded streaming fallback.
    xo = jax.random.normal(jax.random.PRNGKey(2), (4, 100, 7),
                           dtype=jnp.float32)
    yo_ref = _reference(xo)
    yo = jax.block_until_ready(quantized_activation(xo, fused_bytes_limit=0))
    assert yo.shape == xo.shape and yo.dtype == xo.dtype
    assert jnp.allclose(yo, yo_ref, atol=1e-5, rtol=1e-5), "fallback mismatch"

    # 5) bf16 activation -> fused path, dtype-aware tiling.
    xb = jax.random.normal(jax.random.PRNGKey(3), (2, 4, 16, 16),
                           dtype=jnp.bfloat16)
    yb_ref = _reference(xb)
    yb = jax.block_until_ready(quantized_activation(xb))
    assert yb.shape == xb.shape and yb.dtype == xb.dtype
    assert jnp.allclose(yb.astype(jnp.float32), yb_ref.astype(jnp.float32),
                        atol=2e-2, rtol=2e-2), "bf16 path mismatch"

    print("KERNEL_OK")
</pallas_src>

<mosaic_0001>
module attributes {stable_mosaic.version = 11 : i64} {
  func.func @_fused_quant_kernel(%arg0: memref<8x256xf32, #tpu.memory_space<vmem>>, %arg1: memref<8x256xf32, #tpu.memory_space<vmem>>) attributes {dimension_semantics = [], scalar_prefetch = 0 : i64, scratch_operands = 0 : i64, tpu.core_type = #tpu.core_type<tc>} {
    %c0 = arith.constant 0 : index
    %c0_0 = arith.constant 0 : index
    %0 = vector.load %arg0[%c0, %c0_0] : memref<8x256xf32, #tpu.memory_space<vmem>>, vector<8x256xf32>
    %1 = math.absf %0 : vector<8x256xf32>
    %2 = vector.shape_cast %1 : vector<8x256xf32> to vector<1x8x256xf32>
    %cst = arith.constant dense<0xFF800000> : vector<1xf32>
    %3 = vector.multi_reduction <maximumf>, %2, %cst [1, 2] : vector<1x8x256xf32> to vector<1xf32>
    %4 = vector.shape_cast %3 : vector<1xf32> to vector<1x1x1xf32>
    %5 = vector.extract %4[0, 0, 0] : f32 from vector<1x1x1xf32>
    %cst_1 = arith.constant 0.000000e+00 : f32
    %6 = arith.cmpf ogt, %5, %cst_1 : f32
    %cst_2 = arith.constant 1.270000e+02 : f32
    %7 = arith.divf %5, %cst_2 : f32
    %cst_3 = arith.constant 1.000000e+00 : f32
    %8 = arith.select %6, %7, %cst_3 : f32
    %cst_4 = arith.constant 1.270000e+02 : f32
    %9 = arith.divf %cst_4, %5 : f32
    %cst_5 = arith.constant 0.000000e+00 : f32
    %10 = arith.select %6, %9, %cst_5 : f32
    %11 = vector.broadcast %10 : f32 to vector<8x256xf32>
    %12 = arith.mulf %0, %11 : vector<8x256xf32>
    %13 = math.roundeven %12 : vector<8x256xf32>
    %cst_6 = arith.constant -1.270000e+02 : f32
    %cst_7 = arith.constant 1.270000e+02 : f32
    %14 = vector.broadcast %cst_6 : f32 to vector<8x256xf32>
    %15 = arith.maximumf %14, %13 : vector<8x256xf32>
    %16 = vector.broadcast %cst_7 : f32 to vector<8x256xf32>
    %17 = arith.minimumf %16, %15 : vector<8x256xf32>
    %18 = vector.broadcast %8 : f32 to vector<8x256xf32>
    %19 = arith.mulf %17, %18 : vector<8x256xf32>
    %c0_8 = arith.constant 0 : index
    %c0_9 = arith.constant 0 : index
    %20 = vector.load %arg1[%c0_8, %c0_9] : memref<8x256xf32, #tpu.memory_space<vmem>>, vector<8x256xf32>
    tpu.vector_store %arg1[%c0_8, %c0_9], %19 {strides = array<i32>} : memref<8x256xf32, #tpu.memory_space<vmem>>, vector<8x256xf32>,
    return
  }
}

</mosaic_0001>

<bundles_post_ra>
// kernel: tpu_custom_call.1
= control target key start
LH: loop header
LB: loop body
LE: loop exit
PB: predicated region body
PF: predicated region fallthrough
CT: control target
= control target key end

     0   :  { %6 = vsyncpa [#allocation3], 0  ;;  %s170_s0 = inlined_call_operand.hbm [shape: f32[8,256], index: 0, kind: input, shape index: {}]   ;;  %s171_s1 = inlined_call_operand.hbm [shape: f32[8,256], index: 1, kind: output, shape index: {}]  }
   0x1   :  { %7 = vsyncpa [#allocation4], 0  ;;  %s134_s6 = smov [#allocation2]   ;;  %s86_s10 = scalar_lea.hbm %s170_s0, 256 }
   0x2   :  { %s14_s7 = sshll.u32 %s134_s6, 4  ;;  %p87_p0 = scmp.ne.s32.totalorder %s170_s0, %s86_s10  ;;  %s15_s7 = int_to_ptr.vmem [resolvable:$true] %s14_s7 }
   0x3   :  { %p90_p1 = scmp.lt.u32.totalorder %s86_s10, %s170_s0 }
   0x5   :  { %p92_p2 = pnand %p90_p1, %p87_p0 }
   0x7   :  { %95 = shalt.err (!%p92_p2)
}
   0x8   :  { %s96_s15 = scalar_lea.vmem %s15_s7, 256  ;;  %p101_p4 = scmp.lt.s32.totalorder %s15_s7, %s15_s7 }
   0x9   :  { %p97_p3 = scmp.ne.s32.totalorder %s15_s7, %s96_s15  ;;  %p102_p5 = scmp.lt.s32.totalorder %s96_s15, %s96_s15 }
   0xb   :  { %p103_p6 = por %p102_p5, %p101_p4 }
   0xd   :  { %p104_p7 = pnand %p103_p6, %p97_p3 }
   0xf   :  { %107 = shalt.err (!%p104_p7)
}
  0x10   :  { %17 = dma.hbm_to_vmem [thread:$0]  %s170_s0, 256, %s15_s7, [#allocation3]  }
  0x11   :  { %130 = dma.done.wait [#allocation3], 256  }
  0x12   :  { %131 = vsyncadd [#allocation3], 4294967040  ;;  %v21_v0 = vld [vmem:[#allocation2] sm:$0xff]  ;;  %v22_v1 = vld [vmem:[#allocation2 + $0x8] sm:$0xff]  ;;  %s135_s21 = smov [#allocation5]  }
  0x13   :  { %v23_v2 = vand.u32 2147483647, %v21_v0  ;;  %v24_v3 = vand.u32 2147483647, %v22_v1  ;;  %s65_s22 = sshll.u32 %s135_s21, 4  ;;  %s66_s22 = int_to_ptr.vmem [resolvable:$true] %s65_s22 }
  0x14   :  { %s108_s23 = scalar_lea.vmem %s66_s22, 256  ;;  %p113_p10 = scmp.lt.s32.totalorder %s66_s22, %s66_s22 }
  0x15   :  { %v25_v4 = vmax.f32.f32 %v23_v2, %v24_v3  ;;  %p109_p9 = scmp.ne.s32.totalorder %s66_s22, %s108_s23  ;;  %p114_p11 = scmp.lt.s32.totalorder %s108_s23, %s108_s23 }
  0x17   :  { %26 = vmax.xlane.f32.xlu0 %v25_v4  ;;  %p115_p12 = por %p114_p11, %p113_p10 }
  0x19   :  { %p116_p13 = pnand %p115_p12, %p109_p9 }
  0xa4   :  { %v27_v5 = vpop.xlane.xlu0 %26 }
  0xa5   :  { %v28_v6 = vrot.slane %v27_v5, 4 }
  0xa7   :  { %v29_v7 = vmax.f32 %v27_v5, %v28_v6 }
  0xa9   :  { %v30_v8 = vrot.slane %v29_v7, 2 }
  0xab   :  { %v31_v9 = vmax.f32 %v29_v7, %v30_v8 }
  0xad   :  { %v32_v10 = vrot.slane %v31_v9, 1 }
  0xaf   :  { %v33_v11 = vmax.f32 %v31_v9, %v32_v10 }
  0xb1   :  { %76 = vpush %v33_v11 }
  0xe2   :  { %s77_s18 = spop %76 }
  0xe3   :  { %v40_v12 = vstv %s77_s18  ;;  %p35_p8 = scmp.gt.f32.partialorder %s77_s18, 0.0  ;;  %s38_s20 = smul.f32 0.007874016, %s77_s18 }
  0xe4   :  { %84 = vrcp.f32 %v40_v12 }
  0xe5   :  { %s175_s20 = smov (!%p35_p8, %s38_s20), 1.0 }
  0xe6   :  { %v54_v21 = vstv %s175_s20 }
  0xee   :  { %v85_v13 = vpop.eup %84 }
  0xef   :  { %78 = vpush %v85_v13 }
 0x120   :  { %s79_s0 = spop %78 }
 0x121   :  { %s43_s19 = smul.f32 127.0, %s79_s0 }
 0x123   :  { %s173_s19 = smov (!%p35_p8, %s43_s19), 0.0 }
 0x124   :  { %v45_v14 = vstv %s173_s19 }
 0x125   :  { %v46_v15 = vmul.f32 %v45_v14, %v21_v0  ;;  %v47_v16 = vmul.f32 %v45_v14, %v22_v1 }
 0x127   :  { %v80_v17 = vround.rtne.f32 %v46_v15  ;;  %v81_v18 = vround.rtne.f32 %v47_v16 }
 0x129   :  { %v74_v19 = vclamps-f32 %v80_v17, 127.0  ;;  %v75_v20 = vclamps-f32 %v81_v18, 127.0 }
 0x12b   :  { %v55_v22 = vmul.f32 %v74_v19, %v54_v21  ;;  %v56_v23 = vmul.f32 %v75_v20, %v54_v21 }
 0x12d   :  { %57 = vst [vmem:[#allocation5] sm:$0xff] %v55_v22  ;;  %58 = vst [vmem:[#allocation5 + $0x8] sm:$0xff] %v56_v23 }
 0x12e   :  { %119 = shalt.err (!%p116_p13)
}
 0x12f   :  { %s120_s26 = scalar_lea.hbm %s171_s1, 256 }
 0x130   :  { %p121_p0 = scmp.ne.s32.totalorder %s171_s1, %s120_s26  ;;  %p124_p1 = scmp.lt.u32.totalorder %s120_s26, %s171_s1 }
 0x132   :  { %p126_p2 = pnand %p124_p1, %p121_p0 }
 0x134   :  { %129 = shalt.err (!%p126_p2)
}
 0x135   :  { %68 = dma.vmem_to_hbm [thread:$0]  %s66_s22, 256, %s171_s1, [#allocation4]  }
 0x136   :  { %132 = dma.done.wait [#allocation4], 256  }
 0x137   :  { %133 = vsyncadd [#allocation4], 4294967040 }
 0x138   :  { %72 = vsyncpa [#allocation3], 1 }
 0x139   :  { %73 = vsyncpa [#allocation4], 1 }

</bundles_post_ra>
